<compile_context>
chip_gen: v6e
topology: v6e:2x2x1
jax: 0.10.0
libtpu: 0.0.40
codegen_flags: <defaults>
</compile_context>

<pallas_src>
import math

import jax
import jax.numpy as jnp
import numpy as np
from jax.experimental import pallas as pl
from jax.experimental.pallas import tpu as pltpu


# ---------------------------------------------------------------------------
# Sinusoidal timestep-embedding table
# (matches TimestepEmbeddingLayer.create_timestep_embedding)
# ---------------------------------------------------------------------------
def create_timestep_embedding(seq_len, dim, max_period=10000):
    position = jnp.arange(seq_len, dtype=jnp.float32)
    half = dim // 2
    freqs = jnp.exp(
        -math.log(max_period) * jnp.arange(0, half, dtype=jnp.float32) / half
    )
    args = position[:, None] * freqs[None, :]
    embedding = jnp.concatenate([jnp.cos(args), jnp.sin(args)], axis=-1)
    if dim % 2:
        embedding = jnp.concatenate(
            [embedding, jnp.zeros_like(embedding[:, :1])], axis=-1
        )
    return embedding  # (seq_len, dim) float32


def fold_first_layer(emb_table, w1, b1, dtype=jnp.float32):
    """Init-time fold: emb_w1[t] = emb_table[t] @ W1 + b1  -> (T, H).

    Use dtype=jnp.bfloat16 on v5e/v6e to halve HBM bytes (small precision delta).
    """
    folded = emb_table.astype(jnp.float32) @ w1.astype(jnp.float32)
    folded = folded + b1.reshape(1, -1).astype(jnp.float32)
    return folded.astype(dtype)


# ---------------------------------------------------------------------------
# Pallas kernel: one-hot MXU gather from the folded table + SiLU + Linear
# ---------------------------------------------------------------------------
def _timestep_emb_kernel(t_ref,       # VMEM (B, 1)  int32  timestep indices
                         embw1_ref,   # VMEM (T, H)  folded table (emb@W1 + b1)
                         w2_ref,      # VMEM (H, TN) second-layer weight tile
                         b2_ref,      # VMEM (1, TN) second-layer bias tile
                         out_ref):    # VMEM (B, TN) output tile
    B = out_ref.shape[0]
    T = embw1_ref.shape[0]

    # Gather-as-matmul (exact: rows of 0/1).  OOB index -> all-zero row, so no
    # out-of-bounds VMEM read can occur.  Cost scales as B*T; fine for T<=O(1000).
    t_idx = t_ref[...]                                           # (B, 1) int32
    iota = jax.lax.broadcasted_iota(jnp.int32, (B, T), 1)        # (B, T)
    onehot = (iota == t_idx).astype(embw1_ref.dtype)             # (B, T)

    # Layer 1 pre-activation was folded into the table; just select + SiLU.
    h = jnp.dot(onehot, embw1_ref[...],
                preferred_element_type=jnp.float32)              # (B, H) f32
    h = h * jax.nn.sigmoid(h)                                    # SiLU (EUP)

    # Layer 2: Linear (no activation).  Cast to weight dtype, accumulate in f32.
    out = jnp.dot(h.astype(w2_ref.dtype), w2_ref[...],
                  preferred_element_type=jnp.float32)            # (B, TN)
    out = out + b2_ref[...].astype(jnp.float32)
    out_ref[...] = out.astype(out_ref.dtype)


def timestep_embedding_forward(t, emb_w1, w2, b2, *, col_tile=128):
    """t: (B,) integer timesteps.  emb_w1: folded (T, H) table.

    Returns (B, H_out) float32 embeddings.
    """
    B = t.shape[0]
    T, H = emb_w1.shape
    H_in, H_out = w2.shape
    assert H_in == H, "w2 input dim must match folded table width"

    # Column tiling over W2 / output: lets a "parallel" grid axis shard the
    # weight streaming across both TensorCores on v7x.  Single step at H<=128.
    tn = H_out if H_out <= col_tile else col_tile
    assert H_out % tn == 0, "hidden size must be a multiple of the column tile"
    num_tiles = H_out // tn

    t2d = t.astype(jnp.int32).reshape(B, 1)
    b2_2d = b2.reshape(1, H_out)

    # grid-invariant blocks never need a second buffer; varying blocks only need
    # one when there is more than one grid step to pipeline.
    invariant = pl.Buffered(1)
    streamed = pl.Buffered(1) if num_tiles == 1 else pl.Buffered(2)

    grid_spec = pl.GridSpec(
        grid=(num_tiles,),
        in_specs=[
            pl.BlockSpec((B, 1), lambda j: (0, 0), pipeline_mode=invariant),
            pl.BlockSpec((T, H), lambda j: (0, 0), pipeline_mode=invariant),
            pl.BlockSpec((H, tn), lambda j: (0, j), pipeline_mode=streamed),
            pl.BlockSpec((1, tn), lambda j: (0, j), pipeline_mode=streamed),
        ],
        out_specs=pl.BlockSpec((B, tn), lambda j: (0, j)),
    )

    emb_bytes = jnp.dtype(emb_w1.dtype).itemsize
    w2_bytes = jnp.dtype(w2.dtype).itemsize
    cost = pl.CostEstimate(
        flops=2 * B * T * H + 2 * B * H * H_out + 4 * B * H_out,
        transcendentals=B * H,                       # sigmoid in SiLU
        bytes_accessed=(4 * B                        # t
                        + emb_bytes * T * H          # folded table
                        + w2_bytes * H * H_out       # W2
                        + 4 * H_out                  # b2
                        + 4 * B * H_out),            # output
    )

    return pl.pallas_call(
        _timestep_emb_kernel,
        out_shape=jax.ShapeDtypeStruct((B, H_out), jnp.float32),
        grid_spec=grid_spec,
        compiler_params=pltpu.CompilerParams(
            dimension_semantics=("parallel",),
        ),
        cost_estimate=cost,
    )(t2d, emb_w1, w2, b2_2d)


# ---------------------------------------------------------------------------
# Deterministic parameter init (xavier_uniform kernels, zero biases) + reference
# ---------------------------------------------------------------------------
def xavier_uniform(key, fan_in, fan_out):
    bound = math.sqrt(6.0 / (fan_in + fan_out))
    return jax.random.uniform(
        key, (fan_in, fan_out), dtype=jnp.float32, minval=-bound, maxval=bound
    )


def reference_forward(t, emb_table, w1, b1, w2, b2):
    t_freq = emb_table[t]
    h = t_freq @ w1 + b1
    h = h * jax.nn.sigmoid(h)
    return h @ w2 + b2


if __name__ == "__main__":
    # Small shapes consistent with the module
    num_diffusion_steps = 40
    frequency_embedding_size = 256
    hidden_size = 128
    batch = 8

    key = jax.random.PRNGKey(0)
    k_t, k_w1, k_w2 = jax.random.split(key, 3)

    # inputs: scalar timesteps
    t = jax.random.randint(k_t, (batch,), 0, num_diffusion_steps, dtype=jnp.int32)

    # fixed sinusoidal table (non-trainable parameter of the module)
    emb_table = create_timestep_embedding(
        num_diffusion_steps, frequency_embedding_size
    )

    # FFN params: Linear(F -> H), Linear(H -> H); stored as (in, out) so x @ W
    w1 = xavier_uniform(k_w1, frequency_embedding_size, hidden_size)
    b1 = jnp.zeros((hidden_size,), jnp.float32)
    w2 = xavier_uniform(k_w2, hidden_size, hidden_size)
    b2 = jnp.zeros((hidden_size,), jnp.float32)

    # Init-time fold of layer 1 into the fixed table (done once, outside kernel).
    emb_w1 = fold_first_layer(emb_table, w1, b1, dtype=jnp.float32)

    out = timestep_embedding_forward(t, emb_w1, w2, b2)
    out = jax.block_until_ready(out)

    ref = reference_forward(t, emb_table, w1, b1, w2, b2)
    np.testing.assert_allclose(np.asarray(out), np.asarray(ref), rtol=1e-5, atol=2e-5)

    print("KERNEL_OK")
</pallas_src>

<mosaic_0001>
module attributes {stable_mosaic.version = 11 : i64} {
  func.func @_timestep_emb_kernel(%arg0: i32, %arg1: memref<8x1xi32, #tpu.memory_space<vmem>>, %arg2: memref<40x128xf32, #tpu.memory_space<vmem>>, %arg3: memref<128x128xf32, #tpu.memory_space<vmem>>, %arg4: memref<1x128xf32, #tpu.memory_space<vmem>>, %arg5: memref<8x128xf32, #tpu.memory_space<vmem>>) attributes {dimension_semantics = [#tpu.dimension_semantics<parallel>], iteration_bounds = array<i64: 1>, scalar_prefetch = 0 : i64, scratch_operands = 0 : i64, tpu.core_type = #tpu.core_type<tc>, window_params = [{pipeline_mode = #tpu.pipeline_mode<synchronous>, transform_indices = @transform_0, window_bounds = array<i64: 8, 1>}, {pipeline_mode = #tpu.pipeline_mode<synchronous>, transform_indices = @transform_1, window_bounds = array<i64: 40, 128>}, {pipeline_mode = #tpu.pipeline_mode<synchronous>, transform_indices = @transform_2, window_bounds = array<i64: 128, 128>}, {pipeline_mode = #tpu.pipeline_mode<synchronous>, transform_indices = @transform_3, window_bounds = array<i64: 1, 128>}, {transform_indices = @transform_4, window_bounds = array<i64: 8, 128>}]} {
    %c0 = arith.constant 0 : index
    %c0_0 = arith.constant 0 : index
    %0 = vector.load %arg1[%c0, %c0_0] : memref<8x1xi32, #tpu.memory_space<vmem>>, vector<8x1xi32>
    %1 = tpu.iota {dimensions = array<i32: 1>} : vector<8x40xi32>
    %2 = vector.broadcast %0 : vector<8x1xi32> to vector<8x40xi32>
    %3 = arith.cmpi eq, %1, %2 : vector<8x40xi32>
    %4 = arith.extui %3 : vector<8x40xi1> to vector<8x40xi32>
    %5 = arith.sitofp %4 : vector<8x40xi32> to vector<8x40xf32>
    %c0_1 = arith.constant 0 : index
    %c0_2 = arith.constant 0 : index
    %6 = vector.load %arg2[%c0_1, %c0_2] : memref<40x128xf32, #tpu.memory_space<vmem>>, vector<40x128xf32>
    %cst = arith.constant dense<0.000000e+00> : vector<8x128xf32>
    %7 = tpu.matmul %5, %6, %cst {dimension_numbers = #tpu.dot_dimension_numbers<[1], [0], [0], [1], [0, 0, 1, 1], [], []>} : vector<8x40xf32>, vector<40x128xf32>, vector<8x128xf32> -> vector<8x128xf32>
    %8 = arith.negf %7 : vector<8x128xf32>
    %9 = math.exp %8 : vector<8x128xf32>
    %cst_3 = arith.constant 1.000000e+00 : f32
    %10 = vector.broadcast %cst_3 : f32 to vector<8x128xf32>
    %11 = arith.addf %10, %9 : vector<8x128xf32>
    %12 = arith.divf %10, %11 : vector<8x128xf32>
    %13 = arith.mulf %7, %12 : vector<8x128xf32>
    %c0_4 = arith.constant 0 : index
    %c0_5 = arith.constant 0 : index
    %14 = vector.load %arg3[%c0_4, %c0_5] : memref<128x128xf32, #tpu.memory_space<vmem>>, vector<128x128xf32>
    %cst_6 = arith.constant dense<0.000000e+00> : vector<8x128xf32>
    %15 = tpu.matmul %13, %14, %cst_6 {dimension_numbers = #tpu.dot_dimension_numbers<[1], [0], [0], [1], [0, 0, 1, 1], [], []>} : vector<8x128xf32>, vector<128x128xf32>, vector<8x128xf32> -> vector<8x128xf32>
    %c0_7 = arith.constant 0 : index
    %c0_8 = arith.constant 0 : index
    %16 = vector.load %arg4[%c0_7, %c0_8] : memref<1x128xf32, #tpu.memory_space<vmem>>, vector<1x128xf32>
    %17 = vector.broadcast %16 : vector<1x128xf32> to vector<8x128xf32>
    %18 = arith.addf %15, %17 : vector<8x128xf32>
    %c0_9 = arith.constant 0 : index
    %c0_10 = arith.constant 0 : index
    %19 = vector.load %arg5[%c0_9, %c0_10] : memref<8x128xf32, #tpu.memory_space<vmem>>, vector<8x128xf32>
    tpu.vector_store %arg5[%c0_9, %c0_10], %18 {strides = array<i32>} : memref<8x128xf32, #tpu.memory_space<vmem>>, vector<8x128xf32>,
    return
  }
  func.func @transform_0(%arg0: i32) -> (i32, i32) {
    %c0_i32 = arith.constant 0 : i32
    %c0_i32_0 = arith.constant 0 : i32
    %c0_i32_1 = arith.constant 0 : i32
    return %c0_i32, %c0_i32_0 : i32, i32
  }
  func.func @transform_1(%arg0: i32) -> (i32, i32) {
    %c0_i32 = arith.constant 0 : i32
    %c0_i32_0 = arith.constant 0 : i32
    %c0_i32_1 = arith.constant 0 : i32
    return %c0_i32, %c0_i32_0 : i32, i32
  }
  func.func @transform_2(%arg0: i32) -> (i32, i32) {
    %c0_i32 = arith.constant 0 : i32
    %c0_i32_0 = arith.constant 0 : i32
    return %c0_i32, %arg0 : i32, i32
  }
  func.func @transform_3(%arg0: i32) -> (i32, i32) {
    %c0_i32 = arith.constant 0 : i32
    %c0_i32_0 = arith.constant 0 : i32
    return %c0_i32, %arg0 : i32, i32
  }
  func.func @transform_4(%arg0: i32) -> (i32, i32) {
    %c0_i32 = arith.constant 0 : i32
    %c0_i32_0 = arith.constant 0 : i32
    return %c0_i32, %arg0 : i32, i32
  }
}

</mosaic_0001>

<bundles_post_ra>
// kernel: tpu_custom_call.1
= control target key start
LH: loop header
LB: loop body
LE: loop exit
PB: predicated region body
PF: predicated region fallthrough
CT: control target
= control target key end

     0   :  { %9 = vsyncpa [#allocation3], 0  ;;  %s477_s0 = inlined_call_operand.vmem [shape: s32[8,1], index: 0, kind: input, shape index: {}]   ;;  %s478_s1 = inlined_call_operand.hbm [shape: f32[40,128], index: 1, kind: input, shape index: {}]   ;;  %s479_s2 = inlined_call_operand.hbm [shape: f32[128,128], index: 2, kind: input, shape index: {}]   ;;  %s480_s3 = inlined_call_operand.vmem [shape: f32[1,128], index: 3, kind: input, shape index: {}]   ;;  %s481_s4 = inlined_call_operand.hbm [shape: f32[8,128], index: 4, kind: output, shape index: {}]  }
   0x1   :  { %10 = vsyncpa [#allocation6], 0 }
   0x2   :  { %11 = vsyncpa [#allocation4], 0  ;;  %s405_s15 = smov [#allocation2]  }
   0x3   :  { %s19_s16 = sshll.u32 %s405_s15, 4  ;;  %s20_s16 = int_to_ptr.vmem [resolvable:$true] %s19_s16 }
   0x4   :  { %s347_s17 = scalar_lea.vmem %s20_s16, 640  ;;  %p352_p1 = scmp.lt.s32.totalorder %s20_s16, %s20_s16 }
   0x5   :  { %p348_p0 = scmp.ne.s32.totalorder %s20_s16, %s347_s17  ;;  %p353_p2 = scmp.lt.s32.totalorder %s347_s17, %s347_s17 }
   0x7   :  { %p354_p3 = por %p353_p2, %p352_p1 }
   0x9   :  { %p355_p4 = pnand %p354_p3, %p348_p0 }
   0xb   :  { %358 = shalt.err (!%p355_p4)
}
   0xc   :  { %s406_s18 = smov 128   ;;  %s407_s19 = smov 8  }
   0xd   :  { %25 = dma.hbm_to_vmem [thread:$0]  %s478_s1, 640, %s20_s16, [#allocation3], %s406_s18, %s406_s18, %s407_s19  }
   0xe   :  { %s408_s22 = smov [#allocation5]  }
   0xf   :  { %s31_s23 = sshll.u32 %s408_s22, 4  ;;  %s32_s23 = int_to_ptr.vmem [resolvable:$true] %s31_s23 }
  0x10   :  { %s367_s24 = scalar_lea.vmem %s32_s23, 2048  ;;  %p372_p6 = scmp.lt.s32.totalorder %s32_s23, %s32_s23 }
  0x11   :  { %p368_p5 = scmp.ne.s32.totalorder %s32_s23, %s367_s24  ;;  %p373_p7 = scmp.lt.s32.totalorder %s367_s24, %s367_s24 }
  0x13   :  { %p374_p8 = por %p373_p7, %p372_p6 }
  0x15   :  { %p375_p9 = pnand %p374_p8, %p368_p5 }
  0x17   :  { %378 = shalt.err (!%p375_p9)
}
  0x18   :  { %37 = dma.hbm_to_vmem [thread:$0]  %s479_s2, 2048, %s32_s23, [#allocation6], %s406_s18, %s406_s18, %s407_s19  }
  0x19   :  { %399 = dma.done.wait [#allocation3], 640  }
  0x1a   :  { %400 = vsyncadd [#allocation3], 4294966656 }
  0x1b   :  { %401 = dma.done.wait [#allocation6], 2048  }
  0x1c   :  { %402 = vsyncadd [#allocation6], 4294965248  ;;  %v409_v0 = vmov 0   ;;  %v410_v1 = vmov 0.0   ;;  %vm411_vm0 = vmmov 0   ;;  %v46_v2 = vld [vmem:[%s477_s0] sm:$0xff]  ;;  %v47_v8 = vlaneseq }
  0x1d   :  { %334 = vset.pattern.permute.xlu0 %v409_v0  ;;  %278 = vmatprep.subr.mxu0 %v410_v1  ;;  %v59_v3 = vld [vmem:[#allocation2 + $0x20] sm:$0xff]  ;;  %v58_v4 = vld [vmem:[#allocation2 + $0x18] sm:$0xff]  ;;  %v57_v5 = vld [vmem:[#allocation2 + $0x10] sm:$0xff]  ;;  %vm60_vm1 = vcmask 326656   ;;  %s412_s28 = smov [#allocation7]  }
  0x1e   :  { %291 = vmatprep.subr.mxu1 %v410_v1  ;;  %288 = vmatprep.mubr.msk.f32.mxu0 %vm411_vm0, %v410_v1  ;;  %v56_v6 = vld [vmem:[#allocation2 + $0x8] sm:$0xff]  ;;  %v55_v7 = vld [vmem:[#allocation2] sm:$0xff]  ;;  %v48_v9 = vand.u32 127, %v47_v8  ;;  %v155_v13 = vld [vmem:[#allocation5 + $0x70] sm:$0xff]  ;;  %s241_s29 = sshll.u32 %s412_s28, 4  ;;  %s242_s29 = int_to_ptr.vmem [resolvable:$true] %s241_s29 }
  0x1f   :  { %323 = vmatprep.mubr.msk.f32.mxu1 %vm411_vm0, %v410_v1  ;;  %50 = vperm.xlu0 %334, %v46_v2   ;;  %v156_v12 = vld [vmem:[#allocation5 + $0x78] sm:$0xff]  ;;  %v154_v14 = vld [vmem:[#allocation5 + $0x68] sm:$0xff]  ;;  %v153_v15 = vld [vmem:[#allocation5 + $0x60] sm:$0xff]  ;;  %s379_s30 = scalar_lea.vmem %s242_s29, 128  ;;  %p384_p11 = scmp.lt.s32.totalorder %s242_s29, %s242_s29 }
  0x20   :  { %279 = vmatpush3.msra.mxu0 %v59_v3  ;;  %292 = vmatpush3.msra.mxu1 %v156_v12  ;;  %v152_v16 = vld [vmem:[#allocation5 + $0x58] sm:$0xff]  ;;  %v151_v17 = vld [vmem:[#allocation5 + $0x50] sm:$0xff]  ;;  %v150_v18 = vld [vmem:[#allocation5 + $0x48] sm:$0xff]  ;;  %p380_p10 = scmp.ne.s32.totalorder %s242_s29, %s379_s30  ;;  %p385_p12 = scmp.lt.s32.totalorder %s379_s30, %s379_s30 }
  0x21   :  { %280 = vmatprep.subr.mxu0 %v410_v1  ;;  %293 = vmatprep.subr.mxu1 %v410_v1  ;;  %v149_v19 = vld [vmem:[#allocation5 + $0x40] sm:$0xff]  ;;  %v148_v20 = vld [vmem:[#allocation5 + $0x38] sm:$0xff]  ;;  %v147_v21 = vld [vmem:[#allocation5 + $0x30] sm:$0xff] }
  0x22   :  { %281 = vmatpush3.msra.mxu0 %v58_v4  ;;  %294 = vmatpush3.msra.mxu1 %v155_v13  ;;  %v146_v22 = vld [vmem:[#allocation5 + $0x28] sm:$0xff]  ;;  %v145_v23 = vld [vmem:[#allocation5 + $0x20] sm:$0xff]  ;;  %v144_v24 = vld [vmem:[#allocation5 + $0x18] sm:$0xff]  ;;  %p386_p13 = por %p385_p12, %p384_p11 }
  0x23   :  { %282 = vmatprep.subr.mxu0 %v410_v1  ;;  %295 = vmatprep.subr.mxu1 %v410_v1  ;;  %v143_v25 = vld [vmem:[#allocation5 + $0x10] sm:$0xff]  ;;  %v142_v26 = vld [vmem:[#allocation5 + $0x8] sm:$0xff]  ;;  %v141_v27 = vld [vmem:[#allocation5] sm:$0xff] }
  0x24   :  { %283 = vmatpush3.msra.mxu0 %v57_v5  ;;  %296 = vmatpush3.msra.mxu1 %v154_v14  ;;  %v254_v35 = vld [vmem:[%s480_s3] ss:$0 sm:$0xff]  ;;  %p387_p0 = pnand %p386_p13, %p380_p10 }
  0x25   :  { %284 = vmatprep.subr.mxu0 %v410_v1  ;;  %297 = vmatprep.subr.mxu1 %v410_v1 }
  0x26   :  { %285 = vmatpush3.msra.mxu0 %v56_v6  ;;  %298 = vmatpush3.msra.mxu1 %v153_v15 }
  0x27   :  { %286 = vmatprep.subr.mxu0 %v410_v1  ;;  %299 = vmatprep.subr.mxu1 %v410_v1 }
  0x28   :  { %287 = vmatpush3.msra.mxu0 %v55_v7  ;;  %300 = vmatpush3.msra.mxu1 %v152_v16 }
  0x29   :  { %301 = vmatprep.subr.mxu1 %v410_v1 }
  0x2a   :  { %302 = vmatpush3.msra.mxu1 %v151_v17 }
  0x2b   :  { %303 = vmatprep.subr.mxu1 %v410_v1 }
  0x2c   :  { %304 = vmatpush3.msra.mxu1 %v150_v18 }
  0x2d   :  { %305 = vmatprep.subr.mxu1 %v410_v1 }
  0x2e   :  { %306 = vmatpush3.msra.mxu1 %v149_v19 }
  0x2f   :  { %307 = vmatprep.subr.mxu1 %v410_v1 }
  0x30   :  { %308 = vmatpush3.msra.mxu1 %v148_v20 }
  0x31   :  { %309 = vmatprep.subr.mxu1 %v410_v1 }
  0x32   :  { %310 = vmatpush3.msra.mxu1 %v147_v21 }
  0x33   :  { %311 = vmatprep.subr.mxu1 %v410_v1 }
  0x34   :  { %312 = vmatpush3.msra.mxu1 %v146_v22 }
  0x35   :  { %313 = vmatprep.subr.mxu1 %v410_v1 }
  0x36   :  { %314 = vmatpush3.msra.mxu1 %v145_v23 }
  0x37   :  { %315 = vmatprep.subr.mxu1 %v410_v1 }
  0x38   :  { %316 = vmatpush3.msra.mxu1 %v144_v24 }
  0x39   :  { %317 = vmatprep.subr.mxu1 %v410_v1 }
  0x3a   :  { %318 = vmatpush3.msra.mxu1 %v143_v25 }
  0x3b   :  { %319 = vmatprep.subr.mxu1 %v410_v1 }
  0x3c   :  { %320 = vmatpush3.msra.mxu1 %v142_v26 }
  0x3d   :  { %321 = vmatprep.subr.mxu1 %v410_v1 }
  0x3e   :  { %322 = vmatpush3.msra.mxu1 %v141_v27 }
  0x9a   :  { %v51_v10 = vpop.permute.xlu0 %50 }
  0x9b   :  { %vm52_vm2 = vcmp.eq.s32.totalorder %v48_v9, %v51_v10 }
  0x9c   :  { %v251_v11 = vsel %vm52_vm2, 1.0, %v410_v1 }
  0x9d   :  { %289 = vmatmul.mubr.msk.f32.vlgmr.msra.gmra.mxu0 %vm60_vm1, %v251_v11 }
 0x15d   :  { %v130_v28 = vpop.f32.mrf.mxu0 }
 0x15e   :  { %v253_v29 = vmul.f32 -1.442695, %v130_v28 }
 0x15f   :  { %v290_v30 = vpop.f32.mrf.mxu0 }
 0x160   :  { %335 = vpow2.f32 %v253_v29 }
 0x16d   :  { %v336_v31 = vpop.eup %335 }
 0x16e   :  { %v137_v32 = vadd.f32 1.0, %v336_v31 }
 0x170   :  { %337 = vrcp.f32 %v137_v32 }
 0x17d   :  { %v338_v33 = vpop.eup %337 }
 0x17e   :  { %v140_v34 = vmul.f32 %v338_v33, %v130_v28 }
 0x180   :  { %324 = vmatmul.mubr.f32.vlgmr.msra.gmra.mxu1 %v140_v34 }
 0x240   :  { %v230_v36 = vpop.f32.mrf.mxu1 }
 0x241   :  { %v231_v37 = vadd.f32 %v254_v35, %v230_v36 }
 0x242   :  { %v325_v38 = vpop.f32.mrf.mxu1 }
 0x243   :  { %234 = vst [vmem:[#allocation7] sm:$0xff] %v231_v37 }
 0x244   :  { %390 = shalt.err (!%p387_p0)
}
 0x245   :  { %244 = dma.vmem_to_hbm [thread:$0]  %s242_s29, 128, %s481_s4, [#allocation4]  }
 0x246   :  { %403 = dma.done.wait [#allocation4], 128  }
 0x247   :  { %404 = vsyncadd [#allocation4], 4294967168 }
 0x248   :  { %248 = vsyncpa [#allocation3], 1 }
 0x249   :  { %249 = vsyncpa [#allocation6], 1 }
 0x24a   :  { %250 = vsyncpa [#allocation4], 1 }

</bundles_post_ra>
